<compile_context>
chip_gen: v5e
topology: v5e:2x2
jax: 0.10.0
libtpu: 0.0.40
codegen_flags: <defaults>
</compile_context>

<pallas_src>
import jax
import jax.numpy as jnp
from jax.experimental import pallas as pl
from jax.experimental.pallas import tpu as pltpu


def _round_up(a, b):
    return (a + b - 1) // b * b


def _cdiv(a, b):
    return -(-a // b)


def _vmem_budget_bytes():
    """Generation-aware VMEM budget (leave headroom for Mosaic scratch)."""
    try:
        cap = int(pltpu.get_tpu_info().vmem_capacity_bytes)
    except Exception:
        cap = 64 << 20  # conservative fallback (v7x-sized)
    # ~52 MiB on v7x (64 MiB physical), ~105 MiB on v5e/v6e (128 MiB physical).
    return int(cap * 0.82)


# ----------------------------------------------------------------------------
# Kernels
# ----------------------------------------------------------------------------
def ffnn_resident_kernel(x_ref, w1_ref, b1_ref, w2_ref, b2_ref, o_ref):
    """Both weight matrices resident in VMEM; one row tile per grid step."""
    x = x_ref[...]                                              # (tm, Dp) f32
    h = jnp.dot(x.astype(w1_ref.dtype), w1_ref[...],
                preferred_element_type=jnp.float32)             # (tm, Hp) f32
    h = jnp.maximum(h + b1_ref[...], 0.0)
    y = jnp.dot(h.astype(w2_ref.dtype), w2_ref[...],
                preferred_element_type=jnp.float32)             # (tm, Dp) f32
    o_ref[...] = (y + b2_ref[...] + x).astype(o_ref.dtype)


def ffnn_stream_kernel(x_ref, w1_ref, b1_ref, w2_ref, b2_ref, o_ref, acc_ref):
    """Large-D path: stream W1 column-blocks / W2 row-blocks over grid axis 1."""
    j = pl.program_id(1)

    @pl.when(j == 0)
    def _():
        acc_ref[...] = jnp.zeros_like(acc_ref)

    x = x_ref[...]                                              # (tm, Dp) f32
    h = jnp.dot(x.astype(w1_ref.dtype), w1_ref[...],
                preferred_element_type=jnp.float32)             # (tm, th) f32
    h = jnp.maximum(h + b1_ref[...], 0.0)                       # ReLU is per-H elementwise
    acc_ref[...] += jnp.dot(h.astype(w2_ref.dtype), w2_ref[...],
                            preferred_element_type=jnp.float32)  # (tm, Dp) f32

    @pl.when(j == pl.num_programs(1) - 1)
    def _():
        o_ref[...] = (acc_ref[...] + b2_ref[...] + x).astype(o_ref.dtype)


# ----------------------------------------------------------------------------
# Wrappers
# ----------------------------------------------------------------------------
def prepare_ffnn_params(w1, b1, w2, b2, *, weight_dtype=jnp.bfloat16):
    """One-time weight prep: cast to bf16 and zero-pad feature dims to 128.

    Do this once at parameter-load time (not per forward call) to avoid
    re-reading / re-writing the weights from HBM on every step.
    """
    D, H = w1.shape
    Dp = _round_up(D, 128)
    Hp = _round_up(H, 128)
    w1p = jnp.zeros((Dp, Hp), weight_dtype).at[:D, :H].set(w1.astype(weight_dtype))
    b1p = jnp.zeros((1, Hp), jnp.float32).at[0, :H].set(b1.astype(jnp.float32))
    w2p = jnp.zeros((Hp, Dp), weight_dtype).at[:H, :D].set(w2.astype(weight_dtype))
    b2p = jnp.zeros((1, Dp), jnp.float32).at[0, :D].set(b2.astype(jnp.float32))
    return {"w1": w1p, "b1": b1p, "w2": w2p, "b2": b2p,
            "D": D, "H": H, "Dp": Dp, "Hp": Hp}


def ffnn(x2d, params, *, tm_max=256, force_stream=False, th=None):
    """x2d: (N, D) f32 token matrix; params from prepare_ffnn_params."""
    N, D = x2d.shape
    assert D == params["D"], "d_model mismatch with prepared params"
    Dp, Hp = params["Dp"], params["Hp"]
    w1p, b1p, w2p, b2p = params["w1"], params["b1"], params["w2"], params["b2"]
    wbytes = jnp.dtype(w1p.dtype).itemsize

    # --- Row tiling -----------------------------------------------------
    # Pad rows only to a multiple of 8 (sublane), then split into tiles of at
    # most tm_max rows.  Guarantee >= 2 grid steps when there is enough work so
    # the "parallel" row axis can shard across the two v7x TensorCores.
    Np8 = _round_up(N, 8)
    n_tiles = _cdiv(Np8, tm_max)
    if Np8 >= 256:
        n_tiles = max(n_tiles, 2)
    tm = _round_up(_cdiv(Np8, n_tiles), 8)
    Np = tm * n_tiles

    vmem_cap = _vmem_budget_bytes()

    # --- Path selection: resident weights vs. H-streaming ----------------
    # Resident footprint with single-buffered weights (pl.Buffered(1)),
    # double-buffered x/out tiles, f32 h intermediate + bf16 casts.
    resident_bytes = (
        2 * Dp * Hp * wbytes                     # W1 + W2 (single-buffered)
        + (Hp + Dp) * 4                          # biases (f32)
        + 2 * 2 * tm * Dp * 4                    # x / out tiles (dbl-buffered)
        + tm * Hp * 4                            # h (f32)
        + tm * (Dp + Hp) * wbytes                # bf16 casts of x / h
        + (2 << 20)                              # Mosaic internal scratch margin
    )
    use_stream = force_stream or (resident_bytes > vmem_cap)

    # --- Activation padding (skipped entirely when already aligned) ------
    if Np == N and Dp == D:
        xp = x2d
    else:
        xp = jnp.zeros((Np, Dp), x2d.dtype).at[:N, :D].set(x2d)

    flops = 2 * 2 * Np * Dp * Hp
    cost = pl.CostEstimate(
        flops=flops,
        transcendentals=0,
        bytes_accessed=int(2 * Np * Dp * 4 + 2 * Dp * Hp * wbytes + (Hp + Dp) * 4),
    )

    if not use_stream:
        # ---------------- resident-weights path --------------------------
        vmem_bytes = int(min(max(resident_bytes, 4 << 20), vmem_cap))
        out = pl.pallas_call(
            ffnn_resident_kernel,
            out_shape=jax.ShapeDtypeStruct((Np, Dp), x2d.dtype),
            grid_spec=pltpu.PrefetchScalarGridSpec(
                num_scalar_prefetch=0,
                grid=(n_tiles,),
                in_specs=[
                    pl.BlockSpec((tm, Dp), lambda i: (i, 0)),          # x row tile
                    pl.BlockSpec((Dp, Hp), lambda i: (0, 0),
                                 pipeline_mode=pl.Buffered(1)),        # W1 resident
                    pl.BlockSpec((1, Hp), lambda i: (0, 0),
                                 pipeline_mode=pl.Buffered(1)),        # b1
                    pl.BlockSpec((Hp, Dp), lambda i: (0, 0),
                                 pipeline_mode=pl.Buffered(1)),        # W2 resident
                    pl.BlockSpec((1, Dp), lambda i: (0, 0),
                                 pipeline_mode=pl.Buffered(1)),        # b2
                ],
                out_specs=pl.BlockSpec((tm, Dp), lambda i: (i, 0)),
            ),
            compiler_params=pltpu.CompilerParams(
                dimension_semantics=("parallel",),
                vmem_limit_bytes=vmem_bytes,
            ),
            cost_estimate=cost,
        )(xp, w1p, b1p, w2p, b2p)
    else:
        # ---------------- H-streaming path (large d_model) ---------------
        # Choose an H block width (multiple of 128 dividing Hp) that keeps the
        # streamed weight blocks + tiles within the VMEM budget.
        if th is None:
            th = 128
            for cand in (1024, 512, 256):
                if Hp % cand == 0:
                    blk = (2 * 2 * Dp * cand * wbytes + 2 * 2 * tm * Dp * 4
                           + tm * Dp * 4 + tm * cand * 4
                           + tm * (Dp + cand) * wbytes + (2 << 20))
                    if blk <= vmem_cap:
                        th = cand
                        break
        assert Hp % th == 0 and th % 128 == 0
        n_h = Hp // th

        stream_bytes = (
            2 * 2 * Dp * th * wbytes                 # W1/W2 blocks, dbl-buffered
            + 2 * (th + Dp) * 4                      # biases
            + 2 * 2 * tm * Dp * 4                    # x / out tiles
            + tm * Dp * 4                            # f32 accumulator scratch
            + tm * th * 4 + tm * (Dp + th) * wbytes  # h block + casts
            + (2 << 20)
        )
        vmem_bytes = int(min(max(stream_bytes, 4 << 20), vmem_cap))

        out = pl.pallas_call(
            ffnn_stream_kernel,
            out_shape=jax.ShapeDtypeStruct((Np, Dp), x2d.dtype),
            grid_spec=pltpu.PrefetchScalarGridSpec(
                num_scalar_prefetch=0,
                grid=(n_tiles, n_h),
                in_specs=[
                    pl.BlockSpec((tm, Dp), lambda i, j: (i, 0)),   # x row tile
                    pl.BlockSpec((Dp, th), lambda i, j: (0, j)),   # W1 col-block
                    pl.BlockSpec((1, th), lambda i, j: (0, j)),    # b1 block
                    pl.BlockSpec((th, Dp), lambda i, j: (j, 0)),   # W2 row-block
                    pl.BlockSpec((1, Dp), lambda i, j: (0, 0),
                                 pipeline_mode=pl.Buffered(1)),    # b2 (constant)
                ],
                out_specs=pl.BlockSpec((tm, Dp), lambda i, j: (i, 0)),
                scratch_shapes=[pltpu.VMEM((tm, Dp), jnp.float32)],
            ),
            compiler_params=pltpu.CompilerParams(
                dimension_semantics=("parallel", "arbitrary"),
                vmem_limit_bytes=vmem_bytes,
            ),
            cost_estimate=cost,
        )(xp, w1p, b1p, w2p, b2p)

    if Np == N and Dp == D:
        return out
    return out[:N, :D]


# ----------------------------------------------------------------------------
# References
# ----------------------------------------------------------------------------
def ffnn_ref_f32(x2d, w1, b1, w2, b2):
    h = jnp.maximum(x2d @ w1 + b1, 0.0)
    return h @ w2 + b2 + x2d


def ffnn_ref_bf16(x2d, w1, b1, w2, b2):
    # Same bf16-weight / f32-accumulate recipe as the kernel.
    h = jnp.dot(x2d.astype(jnp.bfloat16), w1.astype(jnp.bfloat16),
                preferred_element_type=jnp.float32)
    h = jnp.maximum(h + b1, 0.0)
    y = jnp.dot(h.astype(jnp.bfloat16), w2.astype(jnp.bfloat16),
                preferred_element_type=jnp.float32)
    return y + b2 + x2d


if __name__ == "__main__":
    key = jax.random.PRNGKey(0)

    def make_params(k, d_model):
        k1, k2, k3, k4 = jax.random.split(k, 4)
        bound1 = 1.0 / (d_model ** 0.5)
        bound2 = 1.0 / ((4 * d_model) ** 0.5)
        w1 = jax.random.uniform(k1, (d_model, 4 * d_model), jnp.float32, -bound1, bound1)
        b1 = jax.random.uniform(k2, (4 * d_model,), jnp.float32, -bound1, bound1)
        w2 = jax.random.uniform(k3, (4 * d_model, d_model), jnp.float32, -bound2, bound2)
        b2 = jax.random.uniform(k4, (d_model,), jnp.float32, -bound2, bound2)
        return w1, b1, w2, b2

    # --- Case 1: module-spec shapes (batch=2, seq=8, d_model=32) ---------
    # Resident-weights path with padded feature dims.
    kx, kp, key = jax.random.split(key, 3)
    batch, seq, d_model = 2, 8, 32
    x = jax.random.normal(kx, (batch, seq, d_model), dtype=jnp.float32)
    w1, b1, w2, b2 = make_params(kp, d_model)
    params = prepare_ffnn_params(w1, b1, w2, b2)   # hoisted, done once

    x2d = x.reshape(-1, d_model)
    out = ffnn(x2d, params).reshape(batch, seq, d_model)
    jax.block_until_ready(out)

    ref_bf16 = ffnn_ref_bf16(x2d, w1, b1, w2, b2).reshape(batch, seq, d_model)
    ref_f32 = ffnn_ref_f32(x2d, w1, b1, w2, b2).reshape(batch, seq, d_model)
    assert jnp.allclose(out, ref_bf16, atol=2e-3, rtol=2e-3)
    assert jnp.allclose(out, ref_f32, atol=5e-2, rtol=5e-2)

    # --- Case 2: lane-aligned d_model=128 --------------------------------
    # Exercises (a) the no-padding fast path and (b) the H-streaming path
    # (forced, th=256 -> 2 accumulation steps over H=512).
    kx, kp, key = jax.random.split(key, 3)
    d_model2, n_rows = 128, 16
    x2 = jax.random.normal(kx, (n_rows, d_model2), dtype=jnp.float32)
    w1b, b1b, w2b, b2b = make_params(kp, d_model2)
    params2 = prepare_ffnn_params(w1b, b1b, w2b, b2b)

    out_res = ffnn(x2, params2)
    out_str = ffnn(x2, params2, force_stream=True, th=256)
    jax.block_until_ready((out_res, out_str))
    ref2 = ffnn_ref_bf16(x2, w1b, b1b, w2b, b2b)
    assert jnp.allclose(out_res, ref2, atol=2e-3, rtol=2e-3)
    assert jnp.allclose(out_str, ref2, atol=2e-3, rtol=2e-3)

    print("KERNEL_OK")
</pallas_src>

<mosaic_0001>
module attributes {stable_mosaic.version = 11 : i64} {
  func.func @ffnn_resident_kernel(%arg0: i32, %arg1: memref<16x128xf32, #tpu.memory_space<vmem>>, %arg2: memref<128x128xbf16, #tpu.memory_space<vmem>>, %arg3: memref<1x128xf32, #tpu.memory_space<vmem>>, %arg4: memref<128x128xbf16, #tpu.memory_space<vmem>>, %arg5: memref<1x128xf32, #tpu.memory_space<vmem>>, %arg6: memref<16x128xf32, #tpu.memory_space<vmem>>) attributes {dimension_semantics = [#tpu.dimension_semantics<parallel>], iteration_bounds = array<i64: 1>, scalar_prefetch = 0 : i64, scratch_operands = 0 : i64, tpu.core_type = #tpu.core_type<tc>, window_params = [{transform_indices = @transform_0, window_bounds = array<i64: 16, 128>}, {pipeline_mode = #tpu.pipeline_mode<synchronous>, transform_indices = @transform_1, window_bounds = array<i64: 128, 128>}, {pipeline_mode = #tpu.pipeline_mode<synchronous>, transform_indices = @transform_2, window_bounds = array<i64: 1, 128>}, {pipeline_mode = #tpu.pipeline_mode<synchronous>, transform_indices = @transform_3, window_bounds = array<i64: 128, 128>}, {pipeline_mode = #tpu.pipeline_mode<synchronous>, transform_indices = @transform_4, window_bounds = array<i64: 1, 128>}, {transform_indices = @transform_5, window_bounds = array<i64: 16, 128>}]} {
    %c0 = arith.constant 0 : index
    %c0_0 = arith.constant 0 : index
    %0 = vector.load %arg1[%c0, %c0_0] : memref<16x128xf32, #tpu.memory_space<vmem>>, vector<16x128xf32>
    %1 = arith.truncf %0 : vector<16x128xf32> to vector<16x128xbf16>
    %c0_1 = arith.constant 0 : index
    %c0_2 = arith.constant 0 : index
    %2 = vector.load %arg2[%c0_1, %c0_2] : memref<128x128xbf16, #tpu.memory_space<vmem>>, vector<128x128xbf16>
    %cst = arith.constant dense<0.000000e+00> : vector<16x128xf32>
    %3 = tpu.matmul %1, %2, %cst {dimension_numbers = #tpu.dot_dimension_numbers<[1], [0], [0], [1], [0, 0, 1, 1], [], []>} : vector<16x128xbf16>, vector<128x128xbf16>, vector<16x128xf32> -> vector<16x128xf32>
    %c0_3 = arith.constant 0 : index
    %c0_4 = arith.constant 0 : index
    %4 = vector.load %arg3[%c0_3, %c0_4] : memref<1x128xf32, #tpu.memory_space<vmem>>, vector<1x128xf32>
    %5 = vector.broadcast %4 : vector<1x128xf32> to vector<16x128xf32>
    %6 = arith.addf %3, %5 : vector<16x128xf32>
    %cst_5 = arith.constant 0.000000e+00 : f32
    %7 = vector.broadcast %cst_5 : f32 to vector<16x128xf32>
    %8 = arith.maximumf %6, %7 : vector<16x128xf32>
    %9 = arith.truncf %8 : vector<16x128xf32> to vector<16x128xbf16>
    %c0_6 = arith.constant 0 : index
    %c0_7 = arith.constant 0 : index
    %10 = vector.load %arg4[%c0_6, %c0_7] : memref<128x128xbf16, #tpu.memory_space<vmem>>, vector<128x128xbf16>
    %cst_8 = arith.constant dense<0.000000e+00> : vector<16x128xf32>
    %11 = tpu.matmul %9, %10, %cst_8 {dimension_numbers = #tpu.dot_dimension_numbers<[1], [0], [0], [1], [0, 0, 1, 1], [], []>} : vector<16x128xbf16>, vector<128x128xbf16>, vector<16x128xf32> -> vector<16x128xf32>
    %c0_9 = arith.constant 0 : index
    %c0_10 = arith.constant 0 : index
    %12 = vector.load %arg5[%c0_9, %c0_10] : memref<1x128xf32, #tpu.memory_space<vmem>>, vector<1x128xf32>
    %13 = vector.broadcast %12 : vector<1x128xf32> to vector<16x128xf32>
    %14 = arith.addf %11, %13 : vector<16x128xf32>
    %15 = arith.addf %14, %0 : vector<16x128xf32>
    %c0_11 = arith.constant 0 : index
    %c0_12 = arith.constant 0 : index
    %16 = vector.load %arg6[%c0_11, %c0_12] : memref<16x128xf32, #tpu.memory_space<vmem>>, vector<16x128xf32>
    tpu.vector_store %arg6[%c0_11, %c0_12], %15 {strides = array<i32>} : memref<16x128xf32, #tpu.memory_space<vmem>>, vector<16x128xf32>,
    return
  }
  func.func @transform_0(%arg0: i32) -> (i32, i32) {
    %c0_i32 = arith.constant 0 : i32
    %c0_i32_0 = arith.constant 0 : i32
    return %arg0, %c0_i32 : i32, i32
  }
  func.func @transform_1(%arg0: i32) -> (i32, i32) {
    %c0_i32 = arith.constant 0 : i32
    %c0_i32_0 = arith.constant 0 : i32
    %c0_i32_1 = arith.constant 0 : i32
    return %c0_i32, %c0_i32_0 : i32, i32
  }
  func.func @transform_2(%arg0: i32) -> (i32, i32) {
    %c0_i32 = arith.constant 0 : i32
    %c0_i32_0 = arith.constant 0 : i32
    %c0_i32_1 = arith.constant 0 : i32
    return %c0_i32, %c0_i32_0 : i32, i32
  }
  func.func @transform_3(%arg0: i32) -> (i32, i32) {
    %c0_i32 = arith.constant 0 : i32
    %c0_i32_0 = arith.constant 0 : i32
    %c0_i32_1 = arith.constant 0 : i32
    return %c0_i32, %c0_i32_0 : i32, i32
  }
  func.func @transform_4(%arg0: i32) -> (i32, i32) {
    %c0_i32 = arith.constant 0 : i32
    %c0_i32_0 = arith.constant 0 : i32
    %c0_i32_1 = arith.constant 0 : i32
    return %c0_i32, %c0_i32_0 : i32, i32
  }
  func.func @transform_5(%arg0: i32) -> (i32, i32) {
    %c0_i32 = arith.constant 0 : i32
    %c0_i32_0 = arith.constant 0 : i32
    return %arg0, %c0_i32 : i32, i32
  }
}

</mosaic_0001>

<bundles_post_ra>
// kernel: tpu_custom_call.1
= control target key start
LH: loop header
LB: loop body
LE: loop exit
PB: predicated region body
PF: predicated region fallthrough
CT: control target
= control target key end

     0   :  { %10 = vsyncpa [#allocation3], 0  ;;  %s516_s0 = inlined_call_operand.hbm [shape: f32[16,128], index: 0, kind: input, shape index: {}]   ;;  %s517_s1 = inlined_call_operand.hbm [shape: bf16[128,128], index: 1, kind: input, shape index: {}]   ;;  %s518_s2 = inlined_call_operand.vmem [shape: f32[1,128], index: 2, kind: input, shape index: {}]   ;;  %s519_s3 = inlined_call_operand.hbm [shape: bf16[128,128], index: 3, kind: input, shape index: {}]   ;;  %s520_s4 = inlined_call_operand.vmem [shape: f32[1,128], index: 4, kind: input, shape index: {}]   ;;  %s521_s5 = inlined_call_operand.hbm [shape: f32[16,128], index: 5, kind: output, shape index: {}]  }
   0x1   :  { %11 = vsyncpa [#allocation6], 0  ;;  %s30_s20 = sshll.u32 %s517_s1, 4  ;;  %s31_s20 = int_to_ptr.hbm [resolvable:$true] %s30_s20 }
   0x2   :  { %12 = vsyncpa [#allocation4], 0  ;;  %s454_s21 = smov [#allocation5]   ;;  %s17_s25 = sshll.u32 %s516_s0, 4  ;;  %s18_s25 = int_to_ptr.hbm [resolvable:$true] %s17_s25 }
   0x3   :  { %s32_s22 = sshll.u32 %s454_s21, 4  ;;  %s455_s26 = smov 64   ;;  %s33_s22 = int_to_ptr.vmem [resolvable:$true] %s32_s22 }
   0x4   :  { %s456_s27 = smov 4   ;;  %s457_s28 = smov [#allocation2]  }
   0x5   :  { %38 = dma.hbm_to_vmem [thread:$0]  %s31_s20, 1024, %s33_s22, [#allocation6], %s455_s26, %s455_s26, %s456_s27  }
   0x6   :  { %s19_s29 = sshll.u32 %s457_s28, 4  ;;  %s458_s30 = smov 128   ;;  %s20_s29 = int_to_ptr.vmem [resolvable:$true] %s19_s29 }
   0x7   :  { %s459_s6 = smov 8   ;;  %s45_s8 = sshll.u32 %s519_s3, 4  ;;  %s46_s8 = int_to_ptr.hbm [resolvable:$true] %s45_s8 }
   0x8   :  { %25 = dma.hbm_to_vmem [thread:$0]  %s18_s25, 256, %s20_s29, [#allocation3], %s458_s30, %s458_s30, %s459_s6  }
   0x9   :  { %s460_s9 = smov [#allocation7]  }
   0xa   :  { %s47_s0 = sshll.u32 %s460_s9, 4  ;;  %s48_s0 = int_to_ptr.vmem [resolvable:$true] %s47_s0 }
   0xb   :  { %53 = dma.hbm_to_vmem [thread:$0]  %s46_s8, 1024, %s48_s0, [#allocation6], %s455_s26, %s455_s26, %s456_s27  }
   0xc   :  { %448 = dma.done.wait [#allocation3], 256  }
   0xd   :  { %449 = vsyncadd [#allocation3], 4294967040 }
   0xe   :  { %450 = dma.done.wait [#allocation6], 2048  }
   0xf   :  { %451 = vsyncadd [#allocation6], 4294965248  ;;  %v333_v0 = vld [vmem:[#allocation5 + $0x38] sm:$0xff]  ;;  %v332_v1 = vld [vmem:[#allocation5 + $0x30] sm:$0xff]  ;;  %s461_s13 = smov [#allocation8]   ;;  %s248_s16 = sshll.u32 %s521_s5, 4  ;;  %s249_s16 = int_to_ptr.hbm [resolvable:$true] %s248_s16 }
  0x10   :  { %139 = vmatpush.bf16.msra.mxu0 %v333_v0  ;;  %v341_v2 = vld [vmem:[#allocation7 + $0x38] sm:$0xff]  ;;  %v340_v3 = vld [vmem:[#allocation7 + $0x30] sm:$0xff]  ;;  %v331_v4 = vld [vmem:[#allocation5 + $0x28] sm:$0xff]  ;;  %s246_s14 = sshll.u32 %s461_s13, 4  ;;  %s247_s14 = int_to_ptr.vmem [resolvable:$true] %s246_s14 }
  0x11   :  { %224 = vmatpush.bf16.msra.mxu1 %v341_v2  ;;  %v339_v5 = vld [vmem:[#allocation7 + $0x28] sm:$0xff]  ;;  %v330_v6 = vld [vmem:[#allocation5 + $0x20] sm:$0xff]  ;;  %v329_v8 = vld [vmem:[#allocation5 + $0x18] sm:$0xff] }
  0x12   :  { %v338_v7 = vld [vmem:[#allocation7 + $0x20] sm:$0xff]  ;;  %v328_v9 = vld [vmem:[#allocation5 + $0x10] sm:$0xff]  ;;  %v327_v10 = vld [vmem:[#allocation5 + $0x8] sm:$0xff] }
  0x13   :  { %v326_v11 = vld [vmem:[#allocation5] sm:$0xff]  ;;  %v68_v12 = vld [vmem:[#allocation2] sm:$0xff]  ;;  %v69_v13 = vld [vmem:[#allocation2 + $0x8] sm:$0xff] }
  0x14   :  { %140 = vmatpush.bf16.msra.mxu0 %v332_v1  ;;  %v70_v14 = vpack.c.bf16 %v69_v13, %v68_v12  ;;  %v337_v15 = vld [vmem:[#allocation7 + $0x18] sm:$0xff]  ;;  %v336_v16 = vld [vmem:[#allocation7 + $0x10] sm:$0xff]  ;;  %v335_v17 = vld [vmem:[#allocation7 + $0x8] sm:$0xff] }
  0x15   :  { %225 = vmatpush.bf16.msra.mxu1 %v340_v3  ;;  %v334_v18 = vld [vmem:[#allocation7] sm:$0xff]  ;;  %v350_v20 = vld [vmem:[%s518_s2] ss:$0 sm:$0xff] }
  0x16   :  { %v351_v27 = vld [vmem:[%s520_s4] ss:$0 sm:$0xff] }
  0x18   :  { %141 = vmatpush.bf16.msra.mxu0 %v331_v4 }
  0x19   :  { %226 = vmatpush.bf16.msra.mxu1 %v339_v5 }
  0x1c   :  { %142 = vmatpush.bf16.msra.mxu0 %v330_v6 }
  0x1d   :  { %227 = vmatpush.bf16.msra.mxu1 %v338_v7 }
  0x20   :  { %143 = vmatpush.bf16.msra.mxu0 %v329_v8 }
  0x21   :  { %228 = vmatpush.bf16.msra.mxu1 %v337_v15 }
  0x24   :  { %144 = vmatpush.bf16.msra.mxu0 %v328_v9 }
  0x25   :  { %229 = vmatpush.bf16.msra.mxu1 %v336_v16 }
  0x28   :  { %145 = vmatpush.bf16.msra.mxu0 %v327_v10 }
  0x29   :  { %230 = vmatpush.bf16.msra.mxu1 %v335_v17 }
  0x2c   :  { %146 = vmatpush.bf16.msra.mxu0 %v326_v11 }
  0x2d   :  { %231 = vmatpush.bf16.msra.mxu1 %v334_v18 }
  0x2f   :  { %147 = vmatmul.bf16.vlgmr.msra.gmra.mxu0 %v70_v14 }
  0xac   :  { %v148_v19 = vpop.f32.mrf.mxu0 }
  0xad   :  { %v149_v21 = vadd.f32 %v350_v20, %v148_v19 }
  0xaf   :  { %v153_v24 = vmax.f32 %v149_v21, 0.0 }
  0xb4   :  { %v150_v22 = vpop.f32.mrf.mxu0 }
  0xb5   :  { %v151_v23 = vadd.f32 %v350_v20, %v150_v22 }
  0xb7   :  { %v154_v25 = vmax.f32 %v151_v23, 0.0 }
  0xb9   :  { %v155_v26 = vpack.c.bf16 %v154_v25, %v153_v24 }
  0xbb   :  { %232 = vmatmul.bf16.vlgmr.msra.gmra.mxu1 %v155_v26 }
 0x138   :  { %v233_v28 = vpop.f32.mrf.mxu1 }
 0x139   :  { %v234_v29 = vadd.f32 %v351_v27, %v233_v28 }
 0x13b   :  { %v238_v30 = vadd.f32 %v234_v29, %v68_v12 }
 0x13d   :  { %240 = vst [vmem:[#allocation8] sm:$0xff] %v238_v30 }
 0x140   :  { %v235_v31 = vpop.f32.mrf.mxu1 }
 0x141   :  { %v236_v32 = vadd.f32 %v351_v27, %v235_v31 }
 0x143   :  { %v239_v33 = vadd.f32 %v236_v32, %v69_v13 }
 0x145   :  { %241 = vst [vmem:[#allocation8 + $0x8] sm:$0xff] %v239_v33 }
 0x146   :  { %254 = dma.vmem_to_hbm [thread:$0]  %s247_s14, 256, %s249_s16, [#allocation4], %s458_s30, %s458_s30, %s459_s6  }
 0x147   :  { %452 = dma.done.wait [#allocation4], 256  }
 0x148   :  { %453 = vsyncadd [#allocation4], 4294967040 }
 0x149   :  { %259 = vsyncpa [#allocation3], 1 }
 0x14a   :  { %260 = vsyncpa [#allocation6], 1 }
 0x14b   :  { %261 = vsyncpa [#allocation4], 1 }

</bundles_post_ra>
